<compile_context>
chip_gen: v7x
topology: tpu7x:2x2x1
jax: 0.10.0
libtpu: 0.0.40
codegen_flags: <defaults>
</compile_context>

<pallas_src>
import functools

import jax
import jax.numpy as jnp
from jax.experimental import pallas as pl
from jax.experimental.pallas import tpu as pltpu

LANE = 128
SUBLANE = 8


def _round_up(x, m):
    return ((x + m - 1) // m) * m


def _pick_batch_tile(batch, batch_tile):
    """Lane-aligned batch tile, >= 2 grid steps when the batch allows it."""
    if batch <= LANE:
        return _round_up(batch, SUBLANE)
    b128 = _round_up(batch, LANE)
    tb = min(_round_up(batch_tile, LANE), b128)
    # Cap tb so the grid has at least 2 steps (both v7x TensorCores get work,
    # and DMA for step i+1 hides behind compute for step i).
    half = max(_round_up((b128 + 1) // 2, LANE), LANE)
    return min(tb, half)


def _nli_kernel(num_layers, *refs):
    # refs = (pre, hyp, Wp, Wh, Wm, b1, W2, b2, ..., WL, bL, out)
    pre_ref, hyp_ref = refs[0], refs[1]
    wp_ref, wh_ref, wm_ref, b1_ref = refs[2], refs[3], refs[4], refs[5]
    rest = refs[6:-1]
    out_ref = refs[-1]

    mxu = jnp.bfloat16

    pre = pre_ref[...]                      # f32
    hyp = hyp_ref[...]                      # f32
    ph = pre * hyp                          # elementwise product stays f32 (VPU)

    # Layer 1 with the feature concat folded into the weight (done in wrapper):
    #   concat([pre, hyp, pre-hyp, pre*hyp]) @ W1
    #     == pre @ (W1[0:D]+W1[2D:3D]) + hyp @ (W1[D:2D]-W1[2D:3D]) + (pre*hyp) @ W1[3D:4D]
    # bf16 operands at the MXU boundary only; accumulate in f32.
    x = jnp.dot(pre.astype(mxu), wp_ref[...], preferred_element_type=jnp.float32)
    x = x + jnp.dot(hyp.astype(mxu), wh_ref[...], preferred_element_type=jnp.float32)
    x = x + jnp.dot(ph.astype(mxu), wm_ref[...], preferred_element_type=jnp.float32)
    x = x + b1_ref[...]
    if num_layers > 1:
        x = jnp.maximum(x, 0.0)

    # Remaining Linear layers (+ ReLU except after the last).
    for layer in range(1, num_layers):
        w_ref = rest[2 * (layer - 1)]
        b_ref = rest[2 * (layer - 1) + 1]
        x = jnp.dot(x.astype(mxu), w_ref[...],
                    preferred_element_type=jnp.float32) + b_ref[...]
        if layer < num_layers - 1:
            x = jnp.maximum(x, 0.0)

    out_ref[...] = x.astype(out_ref.dtype)


def prepare_params(weights, biases):
    """One-time parameter prep (hoisted out of the per-call path).

    Folds the 4-way concat into the first-layer weight, zero-pads every layer
    width (and the input feature dim) to a multiple of 128, and casts all
    weights to bf16 (MXU operands).  Biases stay f32.
    weights[i]: [in_i, out_i], biases[i]: [1, out_i].
    """
    num_layers = len(weights)
    d = weights[0].shape[0] // 4
    d_pad = _round_up(d, LANE)
    # NOTE: for v6e/v7x (2x256^2 MXU), padding hidden widths to 256 instead of
    # 128 can help when the true hidden width is near 128/384.
    out_pads = [_round_up(w.shape[1], LANE) for w in weights]

    w1 = weights[0].astype(jnp.float32)
    wp = w1[0:d] + w1[2 * d:3 * d]           # multiplies `pre`
    wh = w1[d:2 * d] - w1[2 * d:3 * d]       # multiplies `hyp`
    wm = w1[3 * d:4 * d]                     # multiplies `pre * hyp`

    def pad2(a, rows, cols):
        return jnp.pad(a, ((0, rows - a.shape[0]), (0, cols - a.shape[1])))

    params = [
        pad2(wp, d_pad, out_pads[0]).astype(jnp.bfloat16),
        pad2(wh, d_pad, out_pads[0]).astype(jnp.bfloat16),
        pad2(wm, d_pad, out_pads[0]).astype(jnp.bfloat16),
        pad2(biases[0], 1, out_pads[0]).astype(jnp.float32),
    ]
    for i in range(1, num_layers):
        params.append(
            pad2(weights[i], out_pads[i - 1], out_pads[i]).astype(jnp.bfloat16))
        params.append(pad2(biases[i], 1, out_pads[i]).astype(jnp.float32))
    return tuple(params)


@functools.partial(
    jax.jit, static_argnames=("out_dim", "batch_tile", "single_buffer_params"))
def nli_classifier_forward(pre, hyp, params, *, out_dim=3, batch_tile=512,
                           single_buffer_params=True):
    """pre, hyp: [B, input_dim] f32.  params: output of prepare_params()."""
    num_layers = (len(params) - 2) // 2
    batch, d = pre.shape
    d_pad = params[0].shape[0]            # padded input feature dim (K axis)
    out_pad_last = params[-1].shape[1]    # padded logits width

    # ---- batch tiling + lane-dense feature padding (fused under jit)
    tb = _pick_batch_tile(batch, batch_tile)
    b_pad = _round_up(batch, tb)
    pre_p = jnp.pad(pre, ((0, b_pad - batch), (0, d_pad - d)))
    hyp_p = jnp.pad(hyp, ((0, b_pad - batch), (0, d_pad - d)))

    act_spec = pl.BlockSpec((tb, d_pad), lambda i: (i, 0))
    out_spec = pl.BlockSpec((tb, out_pad_last), lambda i: (i, 0))
    # Grid-invariant params: single VMEM buffer (no pointless double buffering).
    pm = {"pipeline_mode": pl.Buffered(1)} if single_buffer_params else {}
    param_specs = [pl.BlockSpec(p.shape, lambda i: (0, 0), **pm) for p in params]

    # ---- explicit VMEM budget: params (1 buffer each) + double-buffered
    #      activation/output tiles + headroom, capped at v7x's 64 MiB/TC.
    param_bytes = sum(p.size * p.dtype.itemsize for p in params)
    act_bytes = 2 * 2 * tb * d_pad * 4          # pre + hyp, 2 buffers, f32
    out_bytes = 2 * tb * out_pad_last * 4       # output, 2 buffers, f32
    vmem_limit = int(1.5 * (param_bytes + act_bytes + out_bytes)) + (4 << 20)
    vmem_limit = min(vmem_limit, 64 << 20)

    kernel = functools.partial(_nli_kernel, num_layers)
    out_padded = pl.pallas_call(
        kernel,
        out_shape=jax.ShapeDtypeStruct((b_pad, out_pad_last), jnp.float32),
        grid=(b_pad // tb,),
        in_specs=[act_spec, act_spec] + param_specs,
        out_specs=out_spec,
        compiler_params=pltpu.CompilerParams(
            dimension_semantics=(pltpu.PARALLEL,),
            vmem_limit_bytes=vmem_limit),
    )(pre_p, hyp_p, *params)

    return out_padded[:batch, :out_dim]


def init_params(key, input_dim, hidden_dim, num_layers):
    """Deterministic synthetic init mirroring NLIClassifier.reset_parameters."""
    dims = [4 * input_dim] + [hidden_dim] * (num_layers - 1) + [3]
    weights, biases = [], []
    for i in range(num_layers):
        key, kw, kb = jax.random.split(key, 3)
        fan_in, fan_out = dims[i], dims[i + 1]
        if i == num_layers - 1:
            # init.uniform(last_linear.weight, -0.005, 0.005)
            w = jax.random.uniform(kw, (fan_in, fan_out), jnp.float32, -0.005, 0.005)
        else:
            bound = 1.0 / jnp.sqrt(fan_in)
            w = jax.random.uniform(kw, (fan_in, fan_out), jnp.float32, -bound, bound)
        bound = 1.0 / jnp.sqrt(fan_in)
        b = jax.random.uniform(kb, (1, fan_out), jnp.float32, -bound, bound)
        weights.append(w)
        biases.append(b)
    return weights, biases


def reference_forward(pre, hyp, weights, biases):
    x = jnp.concatenate([pre, hyp, pre - hyp, pre * hyp], axis=1)
    for i, (w, b) in enumerate(zip(weights, biases)):
        x = x @ w + b
        if i < len(weights) - 1:
            x = jnp.maximum(x, 0.0)
    return x


if __name__ == "__main__":
    input_dim = 32
    hidden_dim = 32
    num_layers = 3

    key = jax.random.PRNGKey(0)
    key, kp, kh = jax.random.split(key, 3)
    batch = 8
    pre = jax.random.normal(kp, (batch, input_dim), jnp.float32)
    hyp = jax.random.normal(kh, (batch, input_dim), jnp.float32)
    weights, biases = init_params(key, input_dim, hidden_dim, num_layers)
    params = prepare_params(weights, biases)   # one-time fold + pad + bf16 cast

    def run(pre_, hyp_, **kw):
        try:
            return jax.block_until_ready(
                nli_classifier_forward(pre_, hyp_, params, **kw))
        except Exception:
            # Fallback for jax versions without single-buffer pipeline_mode
            # support on grid-invariant operands.
            return jax.block_until_ready(
                nli_classifier_forward(pre_, hyp_, params,
                                       single_buffer_params=False, **kw))

    # bf16 MXU operands vs. f32 reference => loosened tolerance.
    TOL = dict(atol=2e-3, rtol=5e-2)

    logits = run(pre, hyp)
    ref = reference_forward(pre, hyp, weights, biases)
    assert logits.shape == (batch, 3), logits.shape
    assert jnp.allclose(logits, ref, **TOL), float(jnp.max(jnp.abs(logits - ref)))

    # Second config: multi-step batch grid (2 tiles) + batch-row padding.
    batch2 = 300
    key, kp2, kh2 = jax.random.split(key, 3)
    pre2 = jax.random.normal(kp2, (batch2, input_dim), jnp.float32)
    hyp2 = jax.random.normal(kh2, (batch2, input_dim), jnp.float32)
    logits2 = run(pre2, hyp2, batch_tile=256)
    ref2 = reference_forward(pre2, hyp2, weights, biases)
    assert logits2.shape == (batch2, 3), logits2.shape
    assert jnp.allclose(logits2, ref2, **TOL), float(jnp.max(jnp.abs(logits2 - ref2)))

    print("KERNEL_OK")
</pallas_src>

<mosaic_0001>
module attributes {stable_mosaic.version = 11 : i64} {
  func.func @_nli_kernel(%arg0: i32, %arg1: memref<8x128xf32, #tpu.memory_space<vmem>>, %arg2: memref<8x128xf32, #tpu.memory_space<vmem>>, %arg3: memref<128x128xbf16, #tpu.memory_space<vmem>>, %arg4: memref<128x128xbf16, #tpu.memory_space<vmem>>, %arg5: memref<128x128xbf16, #tpu.memory_space<vmem>>, %arg6: memref<1x128xf32, #tpu.memory_space<vmem>>, %arg7: memref<128x128xbf16, #tpu.memory_space<vmem>>, %arg8: memref<1x128xf32, #tpu.memory_space<vmem>>, %arg9: memref<128x128xbf16, #tpu.memory_space<vmem>>, %arg10: memref<1x128xf32, #tpu.memory_space<vmem>>, %arg11: memref<8x128xf32, #tpu.memory_space<vmem>>) attributes {dimension_semantics = [#tpu.dimension_semantics<parallel>], iteration_bounds = array<i64: 1>, scalar_prefetch = 0 : i64, scratch_operands = 0 : i64, tpu.core_type = #tpu.core_type<tc>, window_params = [{transform_indices = @transform_0, window_bounds = array<i64: 8, 128>}, {transform_indices = @transform_1, window_bounds = array<i64: 8, 128>}, {pipeline_mode = #tpu.pipeline_mode<synchronous>, transform_indices = @transform_2, window_bounds = array<i64: 128, 128>}, {pipeline_mode = #tpu.pipeline_mode<synchronous>, transform_indices = @transform_3, window_bounds = array<i64: 128, 128>}, {pipeline_mode = #tpu.pipeline_mode<synchronous>, transform_indices = @transform_4, window_bounds = array<i64: 128, 128>}, {pipeline_mode = #tpu.pipeline_mode<synchronous>, transform_indices = @transform_5, window_bounds = array<i64: 1, 128>}, {pipeline_mode = #tpu.pipeline_mode<synchronous>, transform_indices = @transform_6, window_bounds = array<i64: 128, 128>}, {pipeline_mode = #tpu.pipeline_mode<synchronous>, transform_indices = @transform_7, window_bounds = array<i64: 1, 128>}, {pipeline_mode = #tpu.pipeline_mode<synchronous>, transform_indices = @transform_8, window_bounds = array<i64: 128, 128>}, {pipeline_mode = #tpu.pipeline_mode<synchronous>, transform_indices = @transform_9, window_bounds = array<i64: 1, 128>}, {transform_indices = @transform_10, window_bounds = array<i64: 8, 128>}]} {
    %c0 = arith.constant 0 : index
    %c0_0 = arith.constant 0 : index
    %0 = vector.load %arg1[%c0, %c0_0] : memref<8x128xf32, #tpu.memory_space<vmem>>, vector<8x128xf32>
    %c0_1 = arith.constant 0 : index
    %c0_2 = arith.constant 0 : index
    %1 = vector.load %arg2[%c0_1, %c0_2] : memref<8x128xf32, #tpu.memory_space<vmem>>, vector<8x128xf32>
    %2 = arith.mulf %0, %1 : vector<8x128xf32>
    %3 = arith.truncf %0 : vector<8x128xf32> to vector<8x128xbf16>
    %c0_3 = arith.constant 0 : index
    %c0_4 = arith.constant 0 : index
    %4 = vector.load %arg3[%c0_3, %c0_4] : memref<128x128xbf16, #tpu.memory_space<vmem>>, vector<128x128xbf16>
    %cst = arith.constant dense<0.000000e+00> : vector<8x128xf32>
    %5 = tpu.matmul %3, %4, %cst {dimension_numbers = #tpu.dot_dimension_numbers<[1], [0], [0], [1], [0, 0, 1, 1], [], []>} : vector<8x128xbf16>, vector<128x128xbf16>, vector<8x128xf32> -> vector<8x128xf32>
    %6 = arith.truncf %1 : vector<8x128xf32> to vector<8x128xbf16>
    %c0_5 = arith.constant 0 : index
    %c0_6 = arith.constant 0 : index
    %7 = vector.load %arg4[%c0_5, %c0_6] : memref<128x128xbf16, #tpu.memory_space<vmem>>, vector<128x128xbf16>
    %cst_7 = arith.constant dense<0.000000e+00> : vector<8x128xf32>
    %8 = tpu.matmul %6, %7, %cst_7 {dimension_numbers = #tpu.dot_dimension_numbers<[1], [0], [0], [1], [0, 0, 1, 1], [], []>} : vector<8x128xbf16>, vector<128x128xbf16>, vector<8x128xf32> -> vector<8x128xf32>
    %9 = arith.addf %5, %8 : vector<8x128xf32>
    %10 = arith.truncf %2 : vector<8x128xf32> to vector<8x128xbf16>
    %c0_8 = arith.constant 0 : index
    %c0_9 = arith.constant 0 : index
    %11 = vector.load %arg5[%c0_8, %c0_9] : memref<128x128xbf16, #tpu.memory_space<vmem>>, vector<128x128xbf16>
    %cst_10 = arith.constant dense<0.000000e+00> : vector<8x128xf32>
    %12 = tpu.matmul %10, %11, %cst_10 {dimension_numbers = #tpu.dot_dimension_numbers<[1], [0], [0], [1], [0, 0, 1, 1], [], []>} : vector<8x128xbf16>, vector<128x128xbf16>, vector<8x128xf32> -> vector<8x128xf32>
    %13 = arith.addf %9, %12 : vector<8x128xf32>
    %c0_11 = arith.constant 0 : index
    %c0_12 = arith.constant 0 : index
    %14 = vector.load %arg6[%c0_11, %c0_12] : memref<1x128xf32, #tpu.memory_space<vmem>>, vector<1x128xf32>
    %15 = vector.broadcast %14 : vector<1x128xf32> to vector<8x128xf32>
    %16 = arith.addf %13, %15 : vector<8x128xf32>
    %cst_13 = arith.constant 0.000000e+00 : f32
    %17 = vector.broadcast %cst_13 : f32 to vector<8x128xf32>
    %18 = arith.maximumf %16, %17 : vector<8x128xf32>
    %19 = arith.truncf %18 : vector<8x128xf32> to vector<8x128xbf16>
    %c0_14 = arith.constant 0 : index
    %c0_15 = arith.constant 0 : index
    %20 = vector.load %arg7[%c0_14, %c0_15] : memref<128x128xbf16, #tpu.memory_space<vmem>>, vector<128x128xbf16>
    %cst_16 = arith.constant dense<0.000000e+00> : vector<8x128xf32>
    %21 = tpu.matmul %19, %20, %cst_16 {dimension_numbers = #tpu.dot_dimension_numbers<[1], [0], [0], [1], [0, 0, 1, 1], [], []>} : vector<8x128xbf16>, vector<128x128xbf16>, vector<8x128xf32> -> vector<8x128xf32>
    %c0_17 = arith.constant 0 : index
    %c0_18 = arith.constant 0 : index
    %22 = vector.load %arg8[%c0_17, %c0_18] : memref<1x128xf32, #tpu.memory_space<vmem>>, vector<1x128xf32>
    %23 = vector.broadcast %22 : vector<1x128xf32> to vector<8x128xf32>
    %24 = arith.addf %21, %23 : vector<8x128xf32>
    %cst_19 = arith.constant 0.000000e+00 : f32
    %25 = vector.broadcast %cst_19 : f32 to vector<8x128xf32>
    %26 = arith.maximumf %24, %25 : vector<8x128xf32>
    %27 = arith.truncf %26 : vector<8x128xf32> to vector<8x128xbf16>
    %c0_20 = arith.constant 0 : index
    %c0_21 = arith.constant 0 : index
    %28 = vector.load %arg9[%c0_20, %c0_21] : memref<128x128xbf16, #tpu.memory_space<vmem>>, vector<128x128xbf16>
    %cst_22 = arith.constant dense<0.000000e+00> : vector<8x128xf32>
    %29 = tpu.matmul %27, %28, %cst_22 {dimension_numbers = #tpu.dot_dimension_numbers<[1], [0], [0], [1], [0, 0, 1, 1], [], []>} : vector<8x128xbf16>, vector<128x128xbf16>, vector<8x128xf32> -> vector<8x128xf32>
    %c0_23 = arith.constant 0 : index
    %c0_24 = arith.constant 0 : index
    %30 = vector.load %arg10[%c0_23, %c0_24] : memref<1x128xf32, #tpu.memory_space<vmem>>, vector<1x128xf32>
    %31 = vector.broadcast %30 : vector<1x128xf32> to vector<8x128xf32>
    %32 = arith.addf %29, %31 : vector<8x128xf32>
    %c0_25 = arith.constant 0 : index
    %c0_26 = arith.constant 0 : index
    %33 = vector.load %arg11[%c0_25, %c0_26] : memref<8x128xf32, #tpu.memory_space<vmem>>, vector<8x128xf32>
    tpu.vector_store %arg11[%c0_25, %c0_26], %32 {strides = array<i32>} : memref<8x128xf32, #tpu.memory_space<vmem>>, vector<8x128xf32>,
    return
  }
  func.func @transform_0(%arg0: i32) -> (i32, i32) {
    %c0_i32 = arith.constant 0 : i32
    %c0_i32_0 = arith.constant 0 : i32
    return %arg0, %c0_i32 : i32, i32
  }
  func.func @transform_1(%arg0: i32) -> (i32, i32) {
    %c0_i32 = arith.constant 0 : i32
    %c0_i32_0 = arith.constant 0 : i32
    return %arg0, %c0_i32 : i32, i32
  }
  func.func @transform_2(%arg0: i32) -> (i32, i32) {
    %c0_i32 = arith.constant 0 : i32
    %c0_i32_0 = arith.constant 0 : i32
    %c0_i32_1 = arith.constant 0 : i32
    return %c0_i32, %c0_i32_0 : i32, i32
  }
  func.func @transform_3(%arg0: i32) -> (i32, i32) {
    %c0_i32 = arith.constant 0 : i32
    %c0_i32_0 = arith.constant 0 : i32
    %c0_i32_1 = arith.constant 0 : i32
    return %c0_i32, %c0_i32_0 : i32, i32
  }
  func.func @transform_4(%arg0: i32) -> (i32, i32) {
    %c0_i32 = arith.constant 0 : i32
    %c0_i32_0 = arith.constant 0 : i32
    %c0_i32_1 = arith.constant 0 : i32
    return %c0_i32, %c0_i32_0 : i32, i32
  }
  func.func @transform_5(%arg0: i32) -> (i32, i32) {
    %c0_i32 = arith.constant 0 : i32
    %c0_i32_0 = arith.constant 0 : i32
    %c0_i32_1 = arith.constant 0 : i32
    return %c0_i32, %c0_i32_0 : i32, i32
  }
  func.func @transform_6(%arg0: i32) -> (i32, i32) {
    %c0_i32 = arith.constant 0 : i32
    %c0_i32_0 = arith.constant 0 : i32
    %c0_i32_1 = arith.constant 0 : i32
    return %c0_i32, %c0_i32_0 : i32, i32
  }
  func.func @transform_7(%arg0: i32) -> (i32, i32) {
    %c0_i32 = arith.constant 0 : i32
    %c0_i32_0 = arith.constant 0 : i32
    %c0_i32_1 = arith.constant 0 : i32
    return %c0_i32, %c0_i32_0 : i32, i32
  }
  func.func @transform_8(%arg0: i32) -> (i32, i32) {
    %c0_i32 = arith.constant 0 : i32
    %c0_i32_0 = arith.constant 0 : i32
    %c0_i32_1 = arith.constant 0 : i32
    return %c0_i32, %c0_i32_0 : i32, i32
  }
  func.func @transform_9(%arg0: i32) -> (i32, i32) {
    %c0_i32 = arith.constant 0 : i32
    %c0_i32_0 = arith.constant 0 : i32
    %c0_i32_1 = arith.constant 0 : i32
    return %c0_i32, %c0_i32_0 : i32, i32
  }
  func.func @transform_10(%arg0: i32) -> (i32, i32) {
    %c0_i32 = arith.constant 0 : i32
    %c0_i32_0 = arith.constant 0 : i32
    return %arg0, %c0_i32 : i32, i32
  }
}

module attributes {stable_mosaic.version = 11 : i64} {
  func.func @_nli_kernel(%arg0: i32, %arg1: memref<8x128xf32, #tpu.memory_space<vmem>>, %arg2: memref<8x128xf32, #tpu.memory_space<vmem>>, %arg3: memref<128x128xbf16, #tpu.memory_space<vmem>>, %arg4: memref<128x128xbf16, #tpu.memory_space<vmem>>, %arg5: memref<128x128xbf16, #tpu.memory_space<vmem>>, %arg6: memref<1x128xf32, #tpu.memory_space<vmem>>, %arg7: memref<128x128xbf16, #tpu.memory_space<vmem>>, %arg8: memref<1x128xf32, #tpu.memory_space<vmem>>, %arg9: memref<128x128xbf16, #tpu.memory_space<vmem>>, %arg10: memref<1x128xf32, #tpu.memory_space<vmem>>, %arg11: memref<8x128xf32, #tpu.memory_space<vmem>>) attributes {dimension_semantics = [#tpu.dimension_semantics<parallel>], iteration_bounds = array<i64: 1>, scalar_prefetch = 0 : i64, scratch_operands = 0 : i64, tpu.core_type = #tpu.core_type<tc>, window_params = [{transform_indices = @transform_0, window_bounds = array<i64: 8, 128>}, {transform_indices = @transform_1, window_bounds = array<i64: 8, 128>}, {pipeline_mode = #tpu.pipeline_mode<synchronous>, transform_indices = @transform_2, window_bounds = array<i64: 128, 128>}, {pipeline_mode = #tpu.pipeline_mode<synchronous>, transform_indices = @transform_3, window_bounds = array<i64: 128, 128>}, {pipeline_mode = #tpu.pipeline_mode<synchronous>, transform_indices = @transform_4, window_bounds = array<i64: 128, 128>}, {pipeline_mode = #tpu.pipeline_mode<synchronous>, transform_indices = @transform_5, window_bounds = array<i64: 1, 128>}, {pipeline_mode = #tpu.pipeline_mode<synchronous>, transform_indices = @transform_6, window_bounds = array<i64: 128, 128>}, {pipeline_mode = #tpu.pipeline_mode<synchronous>, transform_indices = @transform_7, window_bounds = array<i64: 1, 128>}, {pipeline_mode = #tpu.pipeline_mode<synchronous>, transform_indices = @transform_8, window_bounds = array<i64: 128, 128>}, {pipeline_mode = #tpu.pipeline_mode<synchronous>, transform_indices = @transform_9, window_bounds = array<i64: 1, 128>}, {transform_indices = @transform_10, window_bounds = array<i64: 8, 128>}]} {
    %c0 = arith.constant 0 : index
    %c0_0 = arith.constant 0 : index
    %0 = vector.load %arg1[%c0, %c0_0] : memref<8x128xf32, #tpu.memory_space<vmem>>, vector<8x128xf32>
    %c0_1 = arith.constant 0 : index
    %c0_2 = arith.constant 0 : index
    %1 = vector.load %arg2[%c0_1, %c0_2] : memref<8x128xf32, #tpu.memory_space<vmem>>, vector<8x128xf32>
    %2 = arith.mulf %0, %1 : vector<8x128xf32>
    %3 = arith.truncf %0 : vector<8x128xf32> to vector<8x128xbf16>
    %c0_3 = arith.constant 0 : index
    %c0_4 = arith.constant 0 : index
    %4 = vector.load %arg3[%c0_3, %c0_4] : memref<128x128xbf16, #tpu.memory_space<vmem>>, vector<128x128xbf16>
    %cst = arith.constant dense<0.000000e+00> : vector<8x128xf32>
    %5 = tpu.matmul %3, %4, %cst {dimension_numbers = #tpu.dot_dimension_numbers<[1], [0], [0], [1], [0, 0, 1, 1], [], []>} : vector<8x128xbf16>, vector<128x128xbf16>, vector<8x128xf32> -> vector<8x128xf32>
    %6 = arith.truncf %1 : vector<8x128xf32> to vector<8x128xbf16>
    %c0_5 = arith.constant 0 : index
    %c0_6 = arith.constant 0 : index
    %7 = vector.load %arg4[%c0_5, %c0_6] : memref<128x128xbf16, #tpu.memory_space<vmem>>, vector<128x128xbf16>
    %cst_7 = arith.constant dense<0.000000e+00> : vector<8x128xf32>
    %8 = tpu.matmul %6, %7, %cst_7 {dimension_numbers = #tpu.dot_dimension_numbers<[1], [0], [0], [1], [0, 0, 1, 1], [], []>} : vector<8x128xbf16>, vector<128x128xbf16>, vector<8x128xf32> -> vector<8x128xf32>
    %9 = arith.addf %5, %8 : vector<8x128xf32>
    %10 = arith.truncf %2 : vector<8x128xf32> to vector<8x128xbf16>
    %c0_8 = arith.constant 0 : index
    %c0_9 = arith.constant 0 : index
    %11 = vector.load %arg5[%c0_8, %c0_9] : memref<128x128xbf16, #tpu.memory_space<vmem>>, vector<128x128xbf16>
    %cst_10 = arith.constant dense<0.000000e+00> : vector<8x128xf32>
    %12 = tpu.matmul %10, %11, %cst_10 {dimension_numbers = #tpu.dot_dimension_numbers<[1], [0], [0], [1], [0, 0, 1, 1], [], []>} : vector<8x128xbf16>, vector<128x128xbf16>, vector<8x128xf32> -> vector<8x128xf32>
    %13 = arith.addf %9, %12 : vector<8x128xf32>
    %c0_11 = arith.constant 0 : index
    %c0_12 = arith.constant 0 : index
    %14 = vector.load %arg6[%c0_11, %c0_12] : memref<1x128xf32, #tpu.memory_space<vmem>>, vector<1x128xf32>
    %15 = vector.broadcast %14 : vector<1x128xf32> to vector<8x128xf32>
    %16 = arith.addf %13, %15 : vector<8x128xf32>
    %cst_13 = arith.constant 0.000000e+00 : f32
    %17 = vector.broadcast %cst_13 : f32 to vector<8x128xf32>
    %18 = arith.maximumf %16, %17 : vector<8x128xf32>
    %19 = arith.truncf %18 : vector<8x128xf32> to vector<8x128xbf16>
    %c0_14 = arith.constant 0 : index
    %c0_15 = arith.constant 0 : index
    %20 = vector.load %arg7[%c0_14, %c0_15] : memref<128x128xbf16, #tpu.memory_space<vmem>>, vector<128x128xbf16>
    %cst_16 = arith.constant dense<0.000000e+00> : vector<8x128xf32>
    %21 = tpu.matmul %19, %20, %cst_16 {dimension_numbers = #tpu.dot_dimension_numbers<[1], [0], [0], [1], [0, 0, 1, 1], [], []>} : vector<8x128xbf16>, vector<128x128xbf16>, vector<8x128xf32> -> vector<8x128xf32>
    %c0_17 = arith.constant 0 : index
    %c0_18 = arith.constant 0 : index
    %22 = vector.load %arg8[%c0_17, %c0_18] : memref<1x128xf32, #tpu.memory_space<vmem>>, vector<1x128xf32>
    %23 = vector.broadcast %22 : vector<1x128xf32> to vector<8x128xf32>
    %24 = arith.addf %21, %23 : vector<8x128xf32>
    %cst_19 = arith.constant 0.000000e+00 : f32
    %25 = vector.broadcast %cst_19 : f32 to vector<8x128xf32>
    %26 = arith.maximumf %24, %25 : vector<8x128xf32>
    %27 = arith.truncf %26 : vector<8x128xf32> to vector<8x128xbf16>
    %c0_20 = arith.constant 0 : index
    %c0_21 = arith.constant 0 : index
    %28 = vector.load %arg9[%c0_20, %c0_21] : memref<128x128xbf16, #tpu.memory_space<vmem>>, vector<128x128xbf16>
    %cst_22 = arith.constant dense<0.000000e+00> : vector<8x128xf32>
    %29 = tpu.matmul %27, %28, %cst_22 {dimension_numbers = #tpu.dot_dimension_numbers<[1], [0], [0], [1], [0, 0, 1, 1], [], []>} : vector<8x128xbf16>, vector<128x128xbf16>, vector<8x128xf32> -> vector<8x128xf32>
    %c0_23 = arith.constant 0 : index
    %c0_24 = arith.constant 0 : index
    %30 = vector.load %arg10[%c0_23, %c0_24] : memref<1x128xf32, #tpu.memory_space<vmem>>, vector<1x128xf32>
    %31 = vector.broadcast %30 : vector<1x128xf32> to vector<8x128xf32>
    %32 = arith.addf %29, %31 : vector<8x128xf32>
    %c0_25 = arith.constant 0 : index
    %c0_26 = arith.constant 0 : index
    %33 = vector.load %arg11[%c0_25, %c0_26] : memref<8x128xf32, #tpu.memory_space<vmem>>, vector<8x128xf32>
    tpu.vector_store %arg11[%c0_25, %c0_26], %32 {strides = array<i32>} : memref<8x128xf32, #tpu.memory_space<vmem>>, vector<8x128xf32>,
    return
  }
  func.func @transform_0(%arg0: i32) -> (i32, i32) {
    %c0_i32 = arith.constant 0 : i32
    %c0_i32_0 = arith.constant 0 : i32
    return %arg0, %c0_i32 : i32, i32
  }
  func.func @transform_1(%arg0: i32) -> (i32, i32) {
    %c0_i32 = arith.constant 0 : i32
    %c0_i32_0 = arith.constant 0 : i32
    return %arg0, %c0_i32 : i32, i32
  }
  func.func @transform_2(%arg0: i32) -> (i32, i32) {
    %c0_i32 = arith.constant 0 : i32
    %c0_i32_0 = arith.constant 0 : i32
    %c0_i32_1 = arith.constant 0 : i32
    return %c0_i32, %c0_i32_0 : i32, i32
  }
  func.func @transform_3(%arg0: i32) -> (i32, i32) {
    %c0_i32 = arith.constant 0 : i32
    %c0_i32_0 = arith.constant 0 : i32
    %c0_i32_1 = arith.constant 0 : i32
    return %c0_i32, %c0_i32_0 : i32, i32
  }
  func.func @transform_4(%arg0: i32) -> (i32, i32) {
    %c0_i32 = arith.constant 0 : i32
    %c0_i32_0 = arith.constant 0 : i32
    %c0_i32_1 = arith.constant 0 : i32
    return %c0_i32, %c0_i32_0 : i32, i32
  }
  func.func @transform_5(%arg0: i32) -> (i32, i32) {
    %c0_i32 = arith.constant 0 : i32
    %c0_i32_0 = arith.constant 0 : i32
    %c0_i32_1 = arith.constant 0 : i32
    return %c0_i32, %c0_i32_0 : i32, i32
  }
  func.func @transform_6(%arg0: i32) -> (i32, i32) {
    %c0_i32 = arith.constant 0 : i32
    %c0_i32_0 = arith.constant 0 : i32
    %c0_i32_1 = arith.constant 0 : i32
    return %c0_i32, %c0_i32_0 : i32, i32
  }
  func.func @transform_7(%arg0: i32) -> (i32, i32) {
    %c0_i32 = arith.constant 0 : i32
    %c0_i32_0 = arith.constant 0 : i32
    %c0_i32_1 = arith.constant 0 : i32
    return %c0_i32, %c0_i32_0 : i32, i32
  }
  func.func @transform_8(%arg0: i32) -> (i32, i32) {
    %c0_i32 = arith.constant 0 : i32
    %c0_i32_0 = arith.constant 0 : i32
    %c0_i32_1 = arith.constant 0 : i32
    return %c0_i32, %c0_i32_0 : i32, i32
  }
  func.func @transform_9(%arg0: i32) -> (i32, i32) {
    %c0_i32 = arith.constant 0 : i32
    %c0_i32_0 = arith.constant 0 : i32
    %c0_i32_1 = arith.constant 0 : i32
    return %c0_i32, %c0_i32_0 : i32, i32
  }
  func.func @transform_10(%arg0: i32) -> (i32, i32) {
    %c0_i32 = arith.constant 0 : i32
    %c0_i32_0 = arith.constant 0 : i32
    return %arg0, %c0_i32 : i32, i32
  }
}

</mosaic_0001>

<bundles_post_ra>
// kernel: nli_classifier_forward.1
= control target key start
LH: loop header
LB: loop body
LE: loop exit
PB: predicated region body
PF: predicated region fallthrough
CT: control target
= control target key end

     0   :  { %15 = vsyncpa [#allocation3], 0  ;;  %s1304_s0 = inlined_call_operand.vmem [shape: f32[8,128], index: 0, kind: input, shape index: {}]   ;;  %s1305_s1 = inlined_call_operand.vmem [shape: f32[8,128], index: 1, kind: input, shape index: {}]   ;;  %s1306_s2 = inlined_call_operand.hbm [shape: bf16[128,128], index: 2, kind: input, shape index: {}]   ;;  %s1307_s3 = inlined_call_operand.hbm [shape: bf16[128,128], index: 3, kind: input, shape index: {}]   ;;  %s1308_s4 = inlined_call_operand.hbm [shape: bf16[128,128], index: 4, kind: input, shape index: {}]   ;;  %s1309_s5 = inlined_call_operand.hbm [shape: f32[1,128], index: 5, kind: input, shape index: {}]   ;;  %s1310_s6 = inlined_call_operand.hbm [shape: bf16[128,128], index: 6, kind: input, shape index: {}]   ;;  %s1311_s7 = inlined_call_operand.hbm [shape: f32[1,128], index: 7, kind: input, shape index: {}]   ;;  %s1312_s8 = inlined_call_operand.vmem [shape: bf16[128,128], index: 8, kind: input, shape index: {}]   ;;  %s1313_s9 = inlined_call_operand.vmem [shape: f32[1,128], index: 9, kind: input, shape index: {}]   ;;  %s1314_s10 = inlined_call_operand.vmem [shape: f32[8,128], index: 10, kind: output, shape index: {}]  }
   0x1   :  { %16 = vsyncpa [#allocation5], 0 }
   0x2   :  { %17 = vsyncpa [#allocation8], 0 }
   0x3   :  { %18 = vsyncpa [#allocation11], 0  ;;  %s1054_s13 = smov [#allocation4]   ;;  %s1055_s15 = smov [#allocation7]  }
   0x4   :  { %s40_s14 = sshll.u32 %s1054_s13, 4  ;;  %s65_s16 = sshll.u32 %s1055_s15, 4  ;;  %s41_s14 = int_to_ptr.vmem [resolvable:$true] %s40_s14  ;;  %s1119_s16 = int_to_ptr.vmem [resolvable:$true] %s65_s16 }
   0x5   :  { %s914_s19 = scalar_lea.hbm %s1307_s3, 1024 }
   0x6   :  { %p915_p0 = scmp.ne.s32.totalorder %s1307_s3, %s914_s19  ;;  %p918_p1 = scmp.lt.u32.totalorder %s914_s19, %s1307_s3 }
   0x8   :  { %p920_p2 = pnand %p918_p1, %p915_p0 }
   0xa   :  { %923 = shalt.err (!%p920_p2)
}
   0xb   :  { %s924_s24 = scalar_lea.vmem %s41_s14, 1024  ;;  %p929_p4 = scmp.lt.s32.totalorder %s41_s14, %s41_s14 }
   0xc   :  { %p925_p3 = scmp.ne.s32.totalorder %s41_s14, %s924_s24  ;;  %p930_p5 = scmp.lt.s32.totalorder %s924_s24, %s924_s24 }
   0xe   :  { %p931_p6 = por %p930_p5, %p929_p4 }
  0x10   :  { %p932_p7 = pnand %p931_p6, %p925_p3 }
  0x12   :  { %935 = shalt.err (!%p932_p7)
}
  0x13   :  { %s1056_s25 = smov 64   ;;  %s1057_s26 = smov 4  }
  0x14   :  { %46 = dma.hbm_to_vmem [thread:$0]  %s1307_s3, 1024, %s41_s14, [#allocation5], %s1056_s25, %s1056_s25, %s1057_s26  }
  0x15   :  { %s936_s11 = scalar_lea.hbm %s1309_s5, 16 }
  0x16   :  { %p937_p8 = scmp.ne.s32.totalorder %s1309_s5, %s936_s11  ;;  %p940_p9 = scmp.lt.u32.totalorder %s936_s11, %s1309_s5 }
  0x18   :  { %p942_p10 = pnand %p940_p9, %p937_p8 }
  0x1a   :  { %945 = shalt.err (!%p942_p10)
}
  0x1b   :  { %s946_s18 = scalar_lea.vmem %s1119_s16, 16  ;;  %s950_s3 = scalar_lea.vmem %s1119_s16, 32 }
  0x1c   :  { %p947_p11 = scmp.ne.s32.totalorder %s1119_s16, %s946_s18  ;;  %p951_p12 = scmp.lt.s32.totalorder %s1119_s16, %s1119_s16 }
  0x1d   :  { %p952_p13 = scmp.lt.s32.totalorder %s950_s3, %s946_s18 }
  0x1f   :  { %p953_p0 = por %p952_p13, %p951_p12 }
  0x21   :  { %p954_p1 = pnand %p953_p0, %p947_p11 }
  0x23   :  { %957 = shalt.err (!%p954_p1)
}
  0x24   :  { %68 = dma.hbm_to_vmem [thread:$0]  %s1309_s5, 16, %s1119_s16, [#allocation8]  }
  0x25   :  { %s1058_s20 = smov [#allocation2]   ;;  %s1059_s22 = smov [#allocation6]  }
  0x26   :  { %s28_s21 = sshll.u32 %s1058_s20, 4  ;;  %s52_s23 = sshll.u32 %s1059_s22, 4  ;;  %s29_s21 = int_to_ptr.vmem [resolvable:$true] %s28_s21  ;;  %s1154_s23 = int_to_ptr.vmem [resolvable:$true] %s52_s23 }
  0x27   :  { %s958_s28 = scalar_lea.hbm %s1306_s2, 1024 }
  0x28   :  { %p959_p2 = scmp.ne.s32.totalorder %s1306_s2, %s958_s28  ;;  %p962_p3 = scmp.lt.u32.totalorder %s958_s28, %s1306_s2 }
  0x2a   :  { %p964_p4 = pnand %p962_p3, %p959_p2 }
  0x2c   :  { %967 = shalt.err (!%p964_p4)
}
  0x2d   :  { %s968_s5 = scalar_lea.vmem %s29_s21, 1024  ;;  %p973_p6 = scmp.lt.s32.totalorder %s29_s21, %s29_s21 }
  0x2e   :  { %p969_p5 = scmp.ne.s32.totalorder %s29_s21, %s968_s5  ;;  %p974_p7 = scmp.lt.s32.totalorder %s968_s5, %s968_s5 }
  0x30   :  { %p975_p8 = por %p974_p7, %p973_p6 }
  0x32   :  { %p976_p9 = pnand %p975_p8, %p969_p5 }
  0x34   :  { %979 = shalt.err (!%p976_p9)
}
  0x35   :  { %34 = dma.hbm_to_vmem [thread:$0]  %s1306_s2, 1024, %s29_s21, [#allocation3], %s1056_s25, %s1056_s25, %s1057_s26  }
  0x36   :  { %s980_s18 = scalar_lea.hbm %s1308_s4, 1024 }
  0x37   :  { %p981_p10 = scmp.ne.s32.totalorder %s1308_s4, %s980_s18  ;;  %p984_p11 = scmp.lt.u32.totalorder %s980_s18, %s1308_s4 }
  0x39   :  { %p986_p12 = pnand %p984_p11, %p981_p10 }
  0x3b   :  { %989 = shalt.err (!%p986_p12)
}
  0x3c   :  { %s990_s22 = scalar_lea.vmem %s1154_s23, 1024  ;;  %p995_p0 = scmp.lt.s32.totalorder %s1154_s23, %s1154_s23 }
  0x3d   :  { %p991_p13 = scmp.ne.s32.totalorder %s1154_s23, %s990_s22  ;;  %p996_p1 = scmp.lt.s32.totalorder %s990_s22, %s990_s22 }
  0x3f   :  { %p997_p2 = por %p996_p1, %p995_p0 }
  0x41   :  { %p998_p3 = pnand %p997_p2, %p991_p13 }
  0x43   :  { %1001 = shalt.err (!%p998_p3)
}
  0x44   :  { %58 = dma.hbm_to_vmem [thread:$0]  %s1308_s4, 1024, %s1154_s23, [#allocation5], %s1056_s25, %s1056_s25, %s1057_s26  }
  0x45   :  { %s1060_s24 = smov [#allocation9]   ;;  %s1061_s28 = smov [#allocation10]  }
  0x46   :  { %s74_s27 = sshll.u32 %s1060_s24, 4  ;;  %s87_s29 = sshll.u32 %s1061_s28, 4  ;;  %s75_s27 = int_to_ptr.vmem [resolvable:$true] %s74_s27  ;;  %s88_s29 = int_to_ptr.vmem [resolvable:$true] %s87_s29 }
  0x47   :  { %s1002_s12 = scalar_lea.hbm %s1310_s6, 1024 }
  0x48   :  { %p1003_p4 = scmp.ne.s32.totalorder %s1310_s6, %s1002_s12  ;;  %p1006_p5 = scmp.lt.u32.totalorder %s1002_s12, %s1310_s6 }
  0x4a   :  { %p1008_p6 = pnand %p1006_p5, %p1003_p4 }
  0x4c   :  { %1011 = shalt.err (!%p1008_p6)
}
  0x4d   :  { %s1012_s4 = scalar_lea.vmem %s75_s27, 1024  ;;  %p1017_p8 = scmp.lt.s32.totalorder %s75_s27, %s75_s27 }
  0x4e   :  { %p1013_p7 = scmp.ne.s32.totalorder %s75_s27, %s1012_s4  ;;  %p1018_p9 = scmp.lt.s32.totalorder %s1012_s4, %s1012_s4 }
  0x50   :  { %p1019_p10 = por %p1018_p9, %p1017_p8 }
  0x52   :  { %p1020_p11 = pnand %p1019_p10, %p1013_p7 }
  0x54   :  { %1023 = shalt.err (!%p1020_p11)
}
  0x55   :  { %80 = dma.hbm_to_vmem [thread:$0]  %s1310_s6, 1024, %s75_s27, [#allocation8], %s1056_s25, %s1056_s25, %s1057_s26  }
  0x56   :  { %s1024_s14 = scalar_lea.hbm %s1311_s7, 16 }
  0x57   :  { %p1025_p12 = scmp.ne.s32.totalorder %s1311_s7, %s1024_s14  ;;  %p1028_p13 = scmp.lt.u32.totalorder %s1024_s14, %s1311_s7 }
  0x59   :  { %p1030_p0 = pnand %p1028_p13, %p1025_p12 }
  0x5b   :  { %1033 = shalt.err (!%p1030_p0)
}
  0x5c   :  { %s1034_s21 = scalar_lea.vmem %s88_s29, 16  ;;  %s1038_s24 = scalar_lea.vmem %s88_s29, 32 }
  0x5d   :  { %p1035_p1 = scmp.ne.s32.totalorder %s88_s29, %s1034_s21  ;;  %p1039_p2 = scmp.lt.s32.totalorder %s88_s29, %s88_s29 }
  0x5e   :  { %p1040_p3 = scmp.lt.s32.totalorder %s1038_s24, %s1034_s21 }
  0x60   :  { %p1041_p4 = por %p1040_p3, %p1039_p2 }
  0x62   :  { %p1042_p5 = pnand %p1041_p4, %p1035_p1 }
  0x64   :  { %1045 = shalt.err (!%p1042_p5)
}
  0x65   :  { %90 = dma.hbm_to_vmem [thread:$0]  %s1311_s7, 16, %s88_s29, [#allocation11]  }
  0x66   :  { %1046 = dma.done.wait [#allocation3], 1024  }
  0x67   :  { %1047 = vsyncadd [#allocation3], 4294966272 }
  0x68   :  { %1048 = dma.done.wait [#allocation5], 2048  }
  0x69   :  { %1049 = vsyncadd [#allocation5], 4294965248 }
  0x6a   :  { %1050 = dma.done.wait [#allocation8], 1040  }
  0x6b   :  { %1051 = vsyncadd [#allocation8], 4294966256 }
  0x6c   :  { %1052 = dma.done.wait [#allocation11], 16  }
  0x6d   :  { %1053 = vsyncadd [#allocation11], 4294967280  ;;  %v1062_v0 = vmov 0.0   ;;  %vm1063_vm0 = vmmov 0   ;;  %v874_v1 = vld [vmem:[#allocation4] sm:$0xff]   ;;  %v876_v3 = vld [vmem:[#allocation4 + $0x8] sm:$0xff]  }
  0x6e   :  { %764 = vmatprep.subr.bf16.mxu0 %v1062_v0  ;;  %784 = vmatprep.subr.bf16.mxu1 %v1062_v0  ;;  %v875_v2 = vld [vmem:[#allocation2] sm:$0xff]   ;;  %v877_v4 = vld [vmem:[#allocation2 + $0x8] sm:$0xff]   ;;  %v878_v5 = vld [vmem:[#allocation4 + $0x10] sm:$0xff]  }
  0x6f   :  { %780 = vmatprep.mubr.msk.bf16.mxu0 %vm1063_vm0, %v1062_v0  ;;  %800 = vmatprep.mubr.msk.bf16.mxu1 %vm1063_vm0, %v1062_v0  ;;  %v879_v6 = vld [vmem:[#allocation2 + $0x10] sm:$0xff]   ;;  %v880_v7 = vld [vmem:[#allocation4 + $0x18] sm:$0xff]   ;;  %v882_v9 = vld [vmem:[#allocation4 + $0x20] sm:$0xff]  }
  0x70   :  { %765 = vmatpush3.bf16.msra.mxu0 %v874_v1  ;;  %785 = vmatpush3.bf16.msra.mxu1 %v875_v2  ;;  %v881_v8 = vld [vmem:[#allocation2 + $0x18] sm:$0xff]   ;;  %v883_v10 = vld [vmem:[#allocation2 + $0x20] sm:$0xff]   ;;  %v884_v11 = vld [vmem:[#allocation4 + $0x28] sm:$0xff]  }
  0x71   :  { %766 = vmatprep.subr.bf16.mxu0 %v1062_v0  ;;  %786 = vmatprep.subr.bf16.mxu1 %v1062_v0  ;;  %v885_v12 = vld [vmem:[#allocation2 + $0x28] sm:$0xff]   ;;  %v886_v13 = vld [vmem:[#allocation4 + $0x30] sm:$0xff]   ;;  %v888_v15 = vld [vmem:[#allocation4 + $0x38] sm:$0xff]  }
  0x72   :  { %v887_v14 = vld [vmem:[#allocation2 + $0x30] sm:$0xff]   ;;  %v115_v16 = vld [vmem:[%s1305_s1] sm:$0xff]  ;;  %v889_v17 = vld [vmem:[#allocation2 + $0x38] sm:$0xff]  }
  0x73   :  { %v114_v18 = vld [vmem:[%s1304_s0] sm:$0xff]  ;;  %v134_v20 = vpack.c.bf16 %v115_v16, %v115_v16  ;;  %v891_v22 = vld [vmem:[#allocation6 + $0x8] sm:$0xff]   ;;  %v892_v23 = vld [vmem:[#allocation6 + $0x10] sm:$0xff]  }
  0x74   :  { %767 = vmatpush3.bf16.msra.mxu0 %v876_v3  ;;  %787 = vmatpush3.bf16.msra.mxu1 %v877_v4  ;;  %v890_v19 = vld [vmem:[#allocation6] sm:$0xff]   ;;  %v117_v21 = vpack.c.bf16 %v114_v18, %v114_v18  ;;  %v893_v24 = vld [vmem:[#allocation6 + $0x18] sm:$0xff]   ;;  %v895_v26 = vld [vmem:[#allocation6 + $0x28] sm:$0xff]   ;;  %v116_v28 = vmul.f32 %v115_v16, %v114_v18 }
  0x75   :  { %768 = vmatprep.subr.bf16.mxu0 %v1062_v0  ;;  %788 = vmatprep.subr.bf16.mxu1 %v1062_v0  ;;  %v894_v25 = vld [vmem:[#allocation6 + $0x20] sm:$0xff]   ;;  %v896_v27 = vld [vmem:[#allocation6 + $0x30] sm:$0xff]   ;;  %v897_v29 = vld [vmem:[#allocation6 + $0x38] sm:$0xff]  }
  0x76   :  { %v327_v30 = vpack.c.bf16 %v116_v28, %v116_v28  ;;  %v898_v31 = vld [vmem:[#allocation9] sm:$0xff]   ;;  %v899_v32 = vld [vmem:[#allocation9 + $0x8] sm:$0xff]   ;;  %v900_v33 = vld [vmem:[#allocation9 + $0x10] sm:$0xff]  }
  0x77   :  { %v901_v34 = vld [vmem:[#allocation9 + $0x18] sm:$0xff]   ;;  %v902_v35 = vld [vmem:[#allocation9 + $0x20] sm:$0xff]   ;;  %v903_v36 = vld [vmem:[#allocation9 + $0x28] sm:$0xff]  }
  0x78   :  { %769 = vmatpush3.bf16.msra.mxu0 %v878_v5  ;;  %789 = vmatpush3.bf16.msra.mxu1 %v879_v6  ;;  %v904_v37 = vld [vmem:[#allocation9 + $0x30] sm:$0xff]   ;;  %v905_v38 = vld [vmem:[#allocation9 + $0x38] sm:$0xff]   ;;  %v907_v40 = vld [vmem:[%s1312_s8 + $0x8] sm:$0xff]  }
  0x79   :  { %770 = vmatprep.subr.bf16.mxu0 %v1062_v0  ;;  %790 = vmatprep.subr.bf16.mxu1 %v1062_v0  ;;  %v906_v39 = vld [vmem:[%s1312_s8] sm:$0xff]   ;;  %v908_v41 = vld [vmem:[%s1312_s8 + $0x10] sm:$0xff]   ;;  %v909_v42 = vld [vmem:[%s1312_s8 + $0x18] sm:$0xff]  }
  0x7a   :  { %v910_v43 = vld [vmem:[%s1312_s8 + $0x20] sm:$0xff]   ;;  %v911_v44 = vld [vmem:[%s1312_s8 + $0x28] sm:$0xff]   ;;  %v912_v63 = vld [vmem:[%s1312_s8 + $0x30] sm:$0xff]  }
  0x7b   :  { %v700_v55 = vld [vmem:[#allocation7] ss:$0 sm:$0xff]  ;;  %v913_v1 = vld [vmem:[%s1312_s8 + $0x38] sm:$0xff]   ;;  %v701_v2 = vld [vmem:[#allocation10] ss:$0 sm:$0xff] }
  0x7c   :  { %771 = vmatpush3.bf16.msra.mxu0 %v880_v7  ;;  %791 = vmatpush3.bf16.msra.mxu1 %v881_v8 }
  0x7d   :  { %772 = vmatprep.subr.bf16.mxu0 %v1062_v0  ;;  %792 = vmatprep.subr.bf16.mxu1 %v1062_v0 }
  0x80   :  { %773 = vmatpush3.bf16.msra.mxu0 %v882_v9  ;;  %793 = vmatpush3.bf16.msra.mxu1 %v883_v10  ;;  %v710_v10 = vld [vmem:[%s1313_s9] ss:$0 sm:$0xff] }
  0x81   :  { %774 = vmatprep.subr.bf16.mxu0 %v1062_v0  ;;  %794 = vmatprep.subr.bf16.mxu1 %v1062_v0 }
  0x84   :  { %775 = vmatpush3.bf16.msra.mxu0 %v884_v11  ;;  %795 = vmatpush3.bf16.msra.mxu1 %v885_v12 }
  0x85   :  { %776 = vmatprep.subr.bf16.mxu0 %v1062_v0  ;;  %796 = vmatprep.subr.bf16.mxu1 %v1062_v0 }
  0x88   :  { %777 = vmatpush3.bf16.msra.mxu0 %v886_v13  ;;  %797 = vmatpush3.bf16.msra.mxu1 %v887_v14 }
  0x89   :  { %778 = vmatprep.subr.bf16.mxu0 %v1062_v0  ;;  %798 = vmatprep.subr.bf16.mxu1 %v1062_v0 }
  0x8c   :  { %779 = vmatpush3.bf16.msra.mxu0 %v888_v15  ;;  %799 = vmatpush3.bf16.msra.mxu1 %v889_v17 }
  0x8d   :  { %804 = vmatprep.subr.bf16.mxu0 %v1062_v0  ;;  %824 = vmatprep.subr.bf16.mxu1 %v1062_v0 }
  0x8f   :  { %781 = vmatmul.mubr.bf16.vlgmr.msra.gmra.mrb[0].mxu0 %v134_v20  ;;  %801 = vmatmul.mubr.bf16.vlgmr.msra.gmra.mrb[0].mxu1 %v117_v21 }
  0x90   :  { %805 = vmatpush3.bf16.msra.mxu0 %v890_v19  ;;  %820 = vmatprep.mubr.msk.bf16.mxu0 %vm1063_vm0, %v1062_v0 }
  0x91   :  { %806 = vmatprep.subr.bf16.mxu0 %v1062_v0  ;;  %840 = vmatprep.mubr.msk.bf16.mxu1 %vm1063_vm0, %v1062_v0 }
  0x92   :  { %825 = vmatpush3.bf16.msra.mxu1 %v898_v31 }
  0x93   :  { %826 = vmatprep.subr.bf16.mxu1 %v1062_v0 }
  0x94   :  { %807 = vmatpush3.bf16.msra.mxu0 %v891_v22 }
  0x95   :  { %808 = vmatprep.subr.bf16.mxu0 %v1062_v0 }
  0x96   :  { %827 = vmatpush3.bf16.msra.mxu1 %v899_v32 }
  0x97   :  { %828 = vmatprep.subr.bf16.mxu1 %v1062_v0 }
  0x98   :  { %809 = vmatpush3.bf16.msra.mxu0 %v892_v23 }
  0x99   :  { %810 = vmatprep.subr.bf16.mxu0 %v1062_v0 }
  0x9a   :  { %829 = vmatpush3.bf16.msra.mxu1 %v900_v33 }
  0x9b   :  { %830 = vmatprep.subr.bf16.mxu1 %v1062_v0 }
  0x9c   :  { %811 = vmatpush3.bf16.msra.mxu0 %v893_v24 }
  0x9d   :  { %812 = vmatprep.subr.bf16.mxu0 %v1062_v0 }
  0x9e   :  { %831 = vmatpush3.bf16.msra.mxu1 %v901_v34 }
  0x9f   :  { %832 = vmatprep.subr.bf16.mxu1 %v1062_v0 }
  0xa0   :  { %813 = vmatpush3.bf16.msra.mxu0 %v894_v25 }
  0xa1   :  { %814 = vmatprep.subr.bf16.mxu0 %v1062_v0 }
  0xa2   :  { %833 = vmatpush3.bf16.msra.mxu1 %v902_v35 }
  0xa3   :  { %834 = vmatprep.subr.bf16.mxu1 %v1062_v0 }
  0xa4   :  { %815 = vmatpush3.bf16.msra.mxu0 %v895_v26 }
  0xa5   :  { %816 = vmatprep.subr.bf16.mxu0 %v1062_v0 }
  0xa6   :  { %835 = vmatpush3.bf16.msra.mxu1 %v903_v36 }
  0xa7   :  { %836 = vmatprep.subr.bf16.mxu1 %v1062_v0 }
  0xa8   :  { %817 = vmatpush3.bf16.msra.mxu0 %v896_v27 }
  0xa9   :  { %818 = vmatprep.subr.bf16.mxu0 %v1062_v0 }
  0xaa   :  { %837 = vmatpush3.bf16.msra.mxu1 %v904_v37 }
  0xab   :  { %838 = vmatprep.subr.bf16.mxu1 %v1062_v0 }
  0xac   :  { %819 = vmatpush3.bf16.msra.mxu0 %v897_v29 }
  0xad   :  { %844 = vmatprep.subr.bf16.mxu0 %v1062_v0 }
  0xae   :  { %839 = vmatpush3.bf16.msra.mxu1 %v905_v38 }
  0xaf   :  { %821 = vmatmul.mubr.bf16.vlgmr.msra.gmra.mrb[4].mxu0 %v327_v30 }
  0xb0   :  { %860 = vmatprep.mubr.msk.bf16.mxu0 %vm1063_vm0, %v1062_v0  ;;  %845 = vmatpush3.bf16.msra.mxu0 %v906_v39 }
  0xb1   :  { %846 = vmatprep.subr.bf16.mxu0 %v1062_v0 }
  0xb4   :  { %847 = vmatpush3.bf16.msra.mxu0 %v907_v40 }
  0xb5   :  { %848 = vmatprep.subr.bf16.mxu0 %v1062_v0 }
  0xb8   :  { %849 = vmatpush3.bf16.msra.mxu0 %v908_v41 }
  0xb9   :  { %850 = vmatprep.subr.bf16.mxu0 %v1062_v0 }
  0xbc   :  { %851 = vmatpush3.bf16.msra.mxu0 %v909_v42 }
  0xbd   :  { %852 = vmatprep.subr.bf16.mxu0 %v1062_v0 }
  0xc0   :  { %853 = vmatpush3.bf16.msra.mxu0 %v910_v43 }
  0xc1   :  { %854 = vmatprep.subr.bf16.mxu0 %v1062_v0 }
  0xc4   :  { %855 = vmatpush3.bf16.msra.mxu0 %v911_v44 }
  0xc5   :  { %856 = vmatprep.subr.bf16.mxu0 %v1062_v0 }
  0xc8   :  { %857 = vmatpush3.bf16.msra.mxu0 %v912_v63 }
  0xc9   :  { %858 = vmatprep.subr.bf16.mxu0 %v1062_v0 }
  0xcc   :  { %859 = vmatpush3.bf16.msra.mxu0 %v913_v1 }
 0x162   :  { %v233_v45 = vpop.f32.mrb[0].mxu0  ;;  %v321_v47 = vpop.f32.mrb[0].mxu1 }
 0x163   :  { %v782_v46 = vpop.f32.mrb[1].mxu0  ;;  %v322_v48 = vadd.f32 %v321_v47, %v233_v45  ;;  %v802_v50 = vpop.f32.mrb[1].mxu1 }
 0x164   :  { %v236_v49 = vpop.f32.mrb[2].mxu0  ;;  %v324_v52 = vpop.f32.mrb[2].mxu1 }
 0x165   :  { %v783_v51 = vpop.f32.mrb[3].mxu0  ;;  %v803_v53 = vpop.f32.mrb[3].mxu1 }
 0x182   :  { %v426_v54 = vpop.f32.mrb[4].mxu0 }
 0x183   :  { %v432_v56 = vadd.f32 %v426_v54, %v322_v48  ;;  %v822_v57 = vpop.f32.mrb[5].mxu0 }
 0x184   :  { %v429_v58 = vpop.f32.mrb[6].mxu0 }
 0x185   :  { %v440_v59 = vadd.f32 %v700_v55, %v432_v56  ;;  %v823_v60 = vpop.f32.mrb[7].mxu0 }
 0x187   :  { %v441_v61 = vmax.f32 %v440_v59, 0.0 }
 0x189   :  { %v442_v62 = vpack.c.bf16 %v441_v61, %v441_v61 }
 0x18b   :  { %841 = vmatmul.mubr.bf16.vlgmr.msra.gmra.mrb[4].mxu1 %v442_v62 }
 0x25e   :  { %v548_v3 = vpop.f32.mrb[4].mxu1 }
 0x25f   :  { %v549_v4 = vadd.f32 %v701_v2, %v548_v3  ;;  %v842_v5 = vpop.f32.mrb[5].mxu1 }
 0x260   :  { %v551_v6 = vpop.f32.mrb[6].mxu1 }
 0x261   :  { %v554_v7 = vmax.f32 %v549_v4, 0.0  ;;  %v843_v8 = vpop.f32.mrb[7].mxu1 }
 0x263   :  { %v555_v9 = vpack.c.bf16 %v554_v7, %v554_v7 }
 0x265   :  { %861 = vmatmul.mubr.bf16.vlgmr.msra.gmra.mrb[8].mxu0 %v555_v9 }
 0x338   :  { %v661_v11 = vpop.f32.mrb[8].mxu0 }
 0x339   :  { %v662_v0 = vadd.f32 %v710_v10, %v661_v11  ;;  %v862_v12 = vpop.f32.mrb[9].mxu0 }
 0x33a   :  { %v664_v13 = vpop.f32.mrb[10].mxu0 }
 0x33b   :  { %667 = vst [vmem:[%s1314_s10] sm:$0xff] %v662_v0  ;;  %v863_v14 = vpop.f32.mrb[11].mxu0 }
 0x33c   :  { %672 = vsyncpa [#allocation3], 1 }
 0x33d   :  { %673 = vsyncpa [#allocation5], 1 }
 0x33e   :  { %674 = vsyncpa [#allocation8], 1 }
 0x33f   :  { %675 = vsyncpa [#allocation11], 1 }

// kernel: nli_classifier_forward.1
= control target key start
LH: loop header
LB: loop body
LE: loop exit
PB: predicated region body
PF: predicated region fallthrough
CT: control target
= control target key end

     0   :  { %15 = vsyncpa [#allocation3], 0  ;;  %s1304_s0 = inlined_call_operand.vmem [shape: f32[8,128], index: 0, kind: input, shape index: {}]   ;;  %s1305_s1 = inlined_call_operand.vmem [shape: f32[8,128], index: 1, kind: input, shape index: {}]   ;;  %s1306_s2 = inlined_call_operand.hbm [shape: bf16[128,128], index: 2, kind: input, shape index: {}]   ;;  %s1307_s3 = inlined_call_operand.hbm [shape: bf16[128,128], index: 3, kind: input, shape index: {}]   ;;  %s1308_s4 = inlined_call_operand.hbm [shape: bf16[128,128], index: 4, kind: input, shape index: {}]   ;;  %s1309_s5 = inlined_call_operand.hbm [shape: f32[1,128], index: 5, kind: input, shape index: {}]   ;;  %s1310_s6 = inlined_call_operand.hbm [shape: bf16[128,128], index: 6, kind: input, shape index: {}]   ;;  %s1311_s7 = inlined_call_operand.hbm [shape: f32[1,128], index: 7, kind: input, shape index: {}]   ;;  %s1312_s8 = inlined_call_operand.vmem [shape: bf16[128,128], index: 8, kind: input, shape index: {}]   ;;  %s1313_s9 = inlined_call_operand.vmem [shape: f32[1,128], index: 9, kind: input, shape index: {}]   ;;  %s1314_s10 = inlined_call_operand.vmem [shape: f32[8,128], index: 10, kind: output, shape index: {}]  }
   0x1   :  { %16 = vsyncpa [#allocation5], 0 }
   0x2   :  { %17 = vsyncpa [#allocation8], 0 }
   0x3   :  { %18 = vsyncpa [#allocation11], 0  ;;  %s1054_s13 = smov [#allocation4]   ;;  %s1055_s15 = smov [#allocation7]  }
   0x4   :  { %s40_s14 = sshll.u32 %s1054_s13, 4  ;;  %s65_s16 = sshll.u32 %s1055_s15, 4  ;;  %s41_s14 = int_to_ptr.vmem [resolvable:$true] %s40_s14  ;;  %s1119_s16 = int_to_ptr.vmem [resolvable:$true] %s65_s16 }
   0x5   :  { %s914_s19 = scalar_lea.hbm %s1307_s3, 1024 }
   0x6   :  { %p915_p0 = scmp.ne.s32.totalorder %s1307_s3, %s914_s19  ;;  %p918_p1 = scmp.lt.u32.totalorder %s914_s19, %s1307_s3 }
   0x8   :  { %p920_p2 = pnand %p918_p1, %p915_p0 }
   0xa   :  { %923 = shalt.err (!%p920_p2)
}
   0xb   :  { %s924_s24 = scalar_lea.vmem %s41_s14, 1024  ;;  %p929_p4 = scmp.lt.s32.totalorder %s41_s14, %s41_s14 }
   0xc   :  { %p925_p3 = scmp.ne.s32.totalorder %s41_s14, %s924_s24  ;;  %p930_p5 = scmp.lt.s32.totalorder %s924_s24, %s924_s24 }
   0xe   :  { %p931_p6 = por %p930_p5, %p929_p4 }
  0x10   :  { %p932_p7 = pnand %p931_p6, %p925_p3 }
  0x12   :  { %935 = shalt.err (!%p932_p7)
}
  0x13   :  { %s1056_s25 = smov 64   ;;  %s1057_s26 = smov 4  }
  0x14   :  { %46 = dma.hbm_to_vmem [thread:$0]  %s1307_s3, 1024, %s41_s14, [#allocation5], %s1056_s25, %s1056_s25, %s1057_s26  }
  0x15   :  { %s936_s11 = scalar_lea.hbm %s1309_s5, 16 }
  0x16   :  { %p937_p8 = scmp.ne.s32.totalorder %s1309_s5, %s936_s11  ;;  %p940_p9 = scmp.lt.u32.totalorder %s936_s11, %s1309_s5 }
  0x18   :  { %p942_p10 = pnand %p940_p9, %p937_p8 }
  0x1a   :  { %945 = shalt.err (!%p942_p10)
}
  0x1b   :  { %s946_s18 = scalar_lea.vmem %s1119_s16, 16  ;;  %s950_s3 = scalar_lea.vmem %s1119_s16, 32 }
  0x1c   :  { %p947_p11 = scmp.ne.s32.totalorder %s1119_s16, %s946_s18  ;;  %p951_p12 = scmp.lt.s32.totalorder %s1119_s16, %s1119_s16 }
  0x1d   :  { %p952_p13 = scmp.lt.s32.totalorder %s950_s3, %s946_s18 }
  0x1f   :  { %p953_p0 = por %p952_p13, %p951_p12 }
  0x21   :  { %p954_p1 = pnand %p953_p0, %p947_p11 }
  0x23   :  { %957 = shalt.err (!%p954_p1)
}
  0x24   :  { %68 = dma.hbm_to_vmem [thread:$0]  %s1309_s5, 16, %s1119_s16, [#allocation8]  }
  0x25   :  { %s1058_s20 = smov [#allocation2]   ;;  %s1059_s22 = smov [#allocation6]  }
  0x26   :  { %s28_s21 = sshll.u32 %s1058_s20, 4  ;;  %s52_s23 = sshll.u32 %s1059_s22, 4  ;;  %s29_s21 = int_to_ptr.vmem [resolvable:$true] %s28_s21  ;;  %s1154_s23 = int_to_ptr.vmem [resolvable:$true] %s52_s23 }
  0x27   :  { %s958_s28 = scalar_lea.hbm %s1306_s2, 1024 }
  0x28   :  { %p959_p2 = scmp.ne.s32.totalorder %s1306_s2, %s958_s28  ;;  %p962_p3 = scmp.lt.u32.totalorder %s958_s28, %s1306_s2 }
  0x2a   :  { %p964_p4 = pnand %p962_p3, %p959_p2 }
  0x2c   :  { %967 = shalt.err (!%p964_p4)
}
  0x2d   :  { %s968_s5 = scalar_lea.vmem %s29_s21, 1024  ;;  %p973_p6 = scmp.lt.s32.totalorder %s29_s21, %s29_s21 }
  0x2e   :  { %p969_p5 = scmp.ne.s32.totalorder %s29_s21, %s968_s5  ;;  %p974_p7 = scmp.lt.s32.totalorder %s968_s5, %s968_s5 }
  0x30   :  { %p975_p8 = por %p974_p7, %p973_p6 }
  0x32   :  { %p976_p9 = pnand %p975_p8, %p969_p5 }
  0x34   :  { %979 = shalt.err (!%p976_p9)
}
  0x35   :  { %34 = dma.hbm_to_vmem [thread:$0]  %s1306_s2, 1024, %s29_s21, [#allocation3], %s1056_s25, %s1056_s25, %s1057_s26  }
  0x36   :  { %s980_s18 = scalar_lea.hbm %s1308_s4, 1024 }
  0x37   :  { %p981_p10 = scmp.ne.s32.totalorder %s1308_s4, %s980_s18  ;;  %p984_p11 = scmp.lt.u32.totalorder %s980_s18, %s1308_s4 }
  0x39   :  { %p986_p12 = pnand %p984_p11, %p981_p10 }
  0x3b   :  { %989 = shalt.err (!%p986_p12)
}
  0x3c   :  { %s990_s22 = scalar_lea.vmem %s1154_s23, 1024  ;;  %p995_p0 = scmp.lt.s32.totalorder %s1154_s23, %s1154_s23 }
  0x3d   :  { %p991_p13 = scmp.ne.s32.totalorder %s1154_s23, %s990_s22  ;;  %p996_p1 = scmp.lt.s32.totalorder %s990_s22, %s990_s22 }
  0x3f   :  { %p997_p2 = por %p996_p1, %p995_p0 }
  0x41   :  { %p998_p3 = pnand %p997_p2, %p991_p13 }
  0x43   :  { %1001 = shalt.err (!%p998_p3)
}
  0x44   :  { %58 = dma.hbm_to_vmem [thread:$0]  %s1308_s4, 1024, %s1154_s23, [#allocation5], %s1056_s25, %s1056_s25, %s1057_s26  }
  0x45   :  { %s1060_s24 = smov [#allocation9]   ;;  %s1061_s28 = smov [#allocation10]  }
  0x46   :  { %s74_s27 = sshll.u32 %s1060_s24, 4  ;;  %s87_s29 = sshll.u32 %s1061_s28, 4  ;;  %s75_s27 = int_to_ptr.vmem [resolvable:$true] %s74_s27  ;;  %s88_s29 = int_to_ptr.vmem [resolvable:$true] %s87_s29 }
  0x47   :  { %s1002_s12 = scalar_lea.hbm %s1310_s6, 1024 }
  0x48   :  { %p1003_p4 = scmp.ne.s32.totalorder %s1310_s6, %s1002_s12  ;;  %p1006_p5 = scmp.lt.u32.totalorder %s1002_s12, %s1310_s6 }
  0x4a   :  { %p1008_p6 = pnand %p1006_p5, %p1003_p4 }
  0x4c   :  { %1011 = shalt.err (!%p1008_p6)
}
  0x4d   :  { %s1012_s4 = scalar_lea.vmem %s75_s27, 1024  ;;  %p1017_p8 = scmp.lt.s32.totalorder %s75_s27, %s75_s27 }
  0x4e   :  { %p1013_p7 = scmp.ne.s32.totalorder %s75_s27, %s1012_s4  ;;  %p1018_p9 = scmp.lt.s32.totalorder %s1012_s4, %s1012_s4 }
  0x50   :  { %p1019_p10 = por %p1018_p9, %p1017_p8 }
  0x52   :  { %p1020_p11 = pnand %p1019_p10, %p1013_p7 }
  0x54   :  { %1023 = shalt.err (!%p1020_p11)
}
  0x55   :  { %80 = dma.hbm_to_vmem [thread:$0]  %s1310_s6, 1024, %s75_s27, [#allocation8], %s1056_s25, %s1056_s25, %s1057_s26  }
  0x56   :  { %s1024_s14 = scalar_lea.hbm %s1311_s7, 16 }
  0x57   :  { %p1025_p12 = scmp.ne.s32.totalorder %s1311_s7, %s1024_s14  ;;  %p1028_p13 = scmp.lt.u32.totalorder %s1024_s14, %s1311_s7 }
  0x59   :  { %p1030_p0 = pnand %p1028_p13, %p1025_p12 }
  0x5b   :  { %1033 = shalt.err (!%p1030_p0)
}
  0x5c   :  { %s1034_s21 = scalar_lea.vmem %s88_s29, 16  ;;  %s1038_s24 = scalar_lea.vmem %s88_s29, 32 }
  0x5d   :  { %p1035_p1 = scmp.ne.s32.totalorder %s88_s29, %s1034_s21  ;;  %p1039_p2 = scmp.lt.s32.totalorder %s88_s29, %s88_s29 }
  0x5e   :  { %p1040_p3 = scmp.lt.s32.totalorder %s1038_s24, %s1034_s21 }
  0x60   :  { %p1041_p4 = por %p1040_p3, %p1039_p2 }
  0x62   :  { %p1042_p5 = pnand %p1041_p4, %p1035_p1 }
  0x64   :  { %1045 = shalt.err (!%p1042_p5)
}
  0x65   :  { %90 = dma.hbm_to_vmem [thread:$0]  %s1311_s7, 16, %s88_s29, [#allocation11]  }
  0x66   :  { %1046 = dma.done.wait [#allocation3], 1024  }
  0x67   :  { %1047 = vsyncadd [#allocation3], 4294966272 }
  0x68   :  { %1048 = dma.done.wait [#allocation5], 2048  }
  0x69   :  { %1049 = vsyncadd [#allocation5], 4294965248 }
  0x6a   :  { %1050 = dma.done.wait [#allocation8], 1040  }
  0x6b   :  { %1051 = vsyncadd [#allocation8], 4294966256 }
  0x6c   :  { %1052 = dma.done.wait [#allocation11], 16  }
  0x6d   :  { %1053 = vsyncadd [#allocation11], 4294967280  ;;  %v1062_v0 = vmov 0.0   ;;  %vm1063_vm0 = vmmov 0   ;;  %v874_v1 = vld [vmem:[#allocation4] sm:$0xff]   ;;  %v876_v3 = vld [vmem:[#allocation4 + $0x8] sm:$0xff]  }
  0x6e   :  { %764 = vmatprep.subr.bf16.mxu0 %v1062_v0  ;;  %784 = vmatprep.subr.bf16.mxu1 %v1062_v0  ;;  %v875_v2 = vld [vmem:[#allocation2] sm:$0xff]   ;;  %v877_v4 = vld [vmem:[#allocation2 + $0x8] sm:$0xff]   ;;  %v878_v5 = vld [vmem:[#allocation4 + $0x10] sm:$0xff]  }
  0x6f   :  { %780 = vmatprep.mubr.msk.bf16.mxu0 %vm1063_vm0, %v1062_v0  ;;  %800 = vmatprep.mubr.msk.bf16.mxu1 %vm1063_vm0, %v1062_v0  ;;  %v879_v6 = vld [vmem:[#allocation2 + $0x10] sm:$0xff]   ;;  %v880_v7 = vld [vmem:[#allocation4 + $0x18] sm:$0xff]   ;;  %v882_v9 = vld [vmem:[#allocation4 + $0x20] sm:$0xff]  }
  0x70   :  { %765 = vmatpush3.bf16.msra.mxu0 %v874_v1  ;;  %785 = vmatpush3.bf16.msra.mxu1 %v875_v2  ;;  %v881_v8 = vld [vmem:[#allocation2 + $0x18] sm:$0xff]   ;;  %v883_v10 = vld [vmem:[#allocation2 + $0x20] sm:$0xff]   ;;  %v884_v11 = vld [vmem:[#allocation4 + $0x28] sm:$0xff]  }
  0x71   :  { %766 = vmatprep.subr.bf16.mxu0 %v1062_v0  ;;  %786 = vmatprep.subr.bf16.mxu1 %v1062_v0  ;;  %v885_v12 = vld [vmem:[#allocation2 + $0x28] sm:$0xff]   ;;  %v886_v13 = vld [vmem:[#allocation4 + $0x30] sm:$0xff]   ;;  %v888_v15 = vld [vmem:[#allocation4 + $0x38] sm:$0xff]  }
  0x72   :  { %v887_v14 = vld [vmem:[#allocation2 + $0x30] sm:$0xff]   ;;  %v115_v16 = vld [vmem:[%s1305_s1] sm:$0xff]  ;;  %v889_v17 = vld [vmem:[#allocation2 + $0x38] sm:$0xff]  }
  0x73   :  { %v114_v18 = vld [vmem:[%s1304_s0] sm:$0xff]  ;;  %v134_v20 = vpack.c.bf16 %v115_v16, %v115_v16  ;;  %v891_v22 = vld [vmem:[#allocation6 + $0x8] sm:$0xff]   ;;  %v892_v23 = vld [vmem:[#allocation6 + $0x10] sm:$0xff]  }
  0x74   :  { %767 = vmatpush3.bf16.msra.mxu0 %v876_v3  ;;  %787 = vmatpush3.bf16.msra.mxu1 %v877_v4  ;;  %v890_v19 = vld [vmem:[#allocation6] sm:$0xff]   ;;  %v117_v21 = vpack.c.bf16 %v114_v18, %v114_v18  ;;  %v893_v24 = vld [vmem:[#allocation6 + $0x18] sm:$0xff]   ;;  %v895_v26 = vld [vmem:[#allocation6 + $0x28] sm:$0xff]   ;;  %v116_v28 = vmul.f32 %v115_v16, %v114_v18 }
  0x75   :  { %768 = vmatprep.subr.bf16.mxu0 %v1062_v0  ;;  %788 = vmatprep.subr.bf16.mxu1 %v1062_v0  ;;  %v894_v25 = vld [vmem:[#allocation6 + $0x20] sm:$0xff]   ;;  %v896_v27 = vld [vmem:[#allocation6 + $0x30] sm:$0xff]   ;;  %v897_v29 = vld [vmem:[#allocation6 + $0x38] sm:$0xff]  }
  0x76   :  { %v327_v30 = vpack.c.bf16 %v116_v28, %v116_v28  ;;  %v898_v31 = vld [vmem:[#allocation9] sm:$0xff]   ;;  %v899_v32 = vld [vmem:[#allocation9 + $0x8] sm:$0xff]   ;;  %v900_v33 = vld [vmem:[#allocation9 + $0x10] sm:$0xff]  }
  0x77   :  { %v901_v34 = vld [vmem:[#allocation9 + $0x18] sm:$0xff]   ;;  %v902_v35 = vld [vmem:[#allocation9 + $0x20] sm:$0xff]   ;;  %v903_v36 = vld [vmem:[#allocation9 + $0x28] sm:$0xff]  }
  0x78   :  { %769 = vmatpush3.bf16.msra.mxu0 %v878_v5  ;;  %789 = vmatpush3.bf16.msra.mxu1 %v879_v6  ;;  %v904_v37 = vld [vmem:[#allocation9 + $0x30] sm:$0xff]   ;;  %v905_v38 = vld [vmem:[#allocation9 + $0x38] sm:$0xff]   ;;  %v907_v40 = vld [vmem:[%s1312_s8 + $0x8] sm:$0xff]  }
  0x79   :  { %770 = vmatprep.subr.bf16.mxu0 %v1062_v0  ;;  %790 = vmatprep.subr.bf16.mxu1 %v1062_v0  ;;  %v906_v39 = vld [vmem:[%s1312_s8] sm:$0xff]   ;;  %v908_v41 = vld [vmem:[%s1312_s8 + $0x10] sm:$0xff]   ;;  %v909_v42 = vld [vmem:[%s1312_s8 + $0x18] sm:$0xff]  }
  0x7a   :  { %v910_v43 = vld [vmem:[%s1312_s8 + $0x20] sm:$0xff]   ;;  %v911_v44 = vld [vmem:[%s1312_s8 + $0x28] sm:$0xff]   ;;  %v912_v63 = vld [vmem:[%s1312_s8 + $0x30] sm:$0xff]  }
  0x7b   :  { %v700_v55 = vld [vmem:[#allocation7] ss:$0 sm:$0xff]  ;;  %v913_v1 = vld [vmem:[%s1312_s8 + $0x38] sm:$0xff]   ;;  %v701_v2 = vld [vmem:[#allocation10] ss:$0 sm:$0xff] }
  0x7c   :  { %771 = vmatpush3.bf16.msra.mxu0 %v880_v7  ;;  %791 = vmatpush3.bf16.msra.mxu1 %v881_v8 }
  0x7d   :  { %772 = vmatprep.subr.bf16.mxu0 %v1062_v0  ;;  %792 = vmatprep.subr.bf16.mxu1 %v1062_v0 }
  0x80   :  { %773 = vmatpush3.bf16.msra.mxu0 %v882_v9  ;;  %793 = vmatpush3.bf16.msra.mxu1 %v883_v10  ;;  %v710_v10 = vld [vmem:[%s1313_s9] ss:$0 sm:$0xff] }
  0x81   :  { %774 = vmatprep.subr.bf16.mxu0 %v1062_v0  ;;  %794 = vmatprep.subr.bf16.mxu1 %v1062_v0 }
  0x84   :  { %775 = vmatpush3.bf16.msra.mxu0 %v884_v11  ;;  %795 = vmatpush3.bf16.msra.mxu1 %v885_v12 }
  0x85   :  { %776 = vmatprep.subr.bf16.mxu0 %v1062_v0  ;;  %796 = vmatprep.subr.bf16.mxu1 %v1062_v0 }
  0x88   :  { %777 = vmatpush3.bf16.msra.mxu0 %v886_v13  ;;  %797 = vmatpush3.bf16.msra.mxu1 %v887_v14 }
  0x89   :  { %778 = vmatprep.subr.bf16.mxu0 %v1062_v0  ;;  %798 = vmatprep.subr.bf16.mxu1 %v1062_v0 }
  0x8c   :  { %779 = vmatpush3.bf16.msra.mxu0 %v888_v15  ;;  %799 = vmatpush3.bf16.msra.mxu1 %v889_v17 }
  0x8d   :  { %804 = vmatprep.subr.bf16.mxu0 %v1062_v0  ;;  %824 = vmatprep.subr.bf16.mxu1 %v1062_v0 }
  0x8f   :  { %781 = vmatmul.mubr.bf16.vlgmr.msra.gmra.mrb[0].mxu0 %v134_v20  ;;  %801 = vmatmul.mubr.bf16.vlgmr.msra.gmra.mrb[0].mxu1 %v117_v21 }
  0x90   :  { %805 = vmatpush3.bf16.msra.mxu0 %v890_v19  ;;  %820 = vmatprep.mubr.msk.bf16.mxu0 %vm1063_vm0, %v1062_v0 }
  0x91   :  { %806 = vmatprep.subr.bf16.mxu0 %v1062_v0  ;;  %840 = vmatprep.mubr.msk.bf16.mxu1 %vm1063_vm0, %v1062_v0 }
  0x92   :  { %825 = vmatpush3.bf16.msra.mxu1 %v898_v31 }
  0x93   :  { %826 = vmatprep.subr.bf16.mxu1 %v1062_v0 }
  0x94   :  { %807 = vmatpush3.bf16.msra.mxu0 %v891_v22 }
  0x95   :  { %808 = vmatprep.subr.bf16.mxu0 %v1062_v0 }
  0x96   :  { %827 = vmatpush3.bf16.msra.mxu1 %v899_v32 }
  0x97   :  { %828 = vmatprep.subr.bf16.mxu1 %v1062_v0 }
  0x98   :  { %809 = vmatpush3.bf16.msra.mxu0 %v892_v23 }
  0x99   :  { %810 = vmatprep.subr.bf16.mxu0 %v1062_v0 }
  0x9a   :  { %829 = vmatpush3.bf16.msra.mxu1 %v900_v33 }
  0x9b   :  { %830 = vmatprep.subr.bf16.mxu1 %v1062_v0 }
  0x9c   :  { %811 = vmatpush3.bf16.msra.mxu0 %v893_v24 }
  0x9d   :  { %812 = vmatprep.subr.bf16.mxu0 %v1062_v0 }
  0x9e   :  { %831 = vmatpush3.bf16.msra.mxu1 %v901_v34 }
  0x9f   :  { %832 = vmatprep.subr.bf16.mxu1 %v1062_v0 }
  0xa0   :  { %813 = vmatpush3.bf16.msra.mxu0 %v894_v25 }
  0xa1   :  { %814 = vmatprep.subr.bf16.mxu0 %v1062_v0 }
  0xa2   :  { %833 = vmatpush3.bf16.msra.mxu1 %v902_v35 }
  0xa3   :  { %834 = vmatprep.subr.bf16.mxu1 %v1062_v0 }
  0xa4   :  { %815 = vmatpush3.bf16.msra.mxu0 %v895_v26 }
  0xa5   :  { %816 = vmatprep.subr.bf16.mxu0 %v1062_v0 }
  0xa6   :  { %835 = vmatpush3.bf16.msra.mxu1 %v903_v36 }
  0xa7   :  { %836 = vmatprep.subr.bf16.mxu1 %v1062_v0 }
  0xa8   :  { %817 = vmatpush3.bf16.msra.mxu0 %v896_v27 }
  0xa9   :  { %818 = vmatprep.subr.bf16.mxu0 %v1062_v0 }
  0xaa   :  { %837 = vmatpush3.bf16.msra.mxu1 %v904_v37 }
  0xab   :  { %838 = vmatprep.subr.bf16.mxu1 %v1062_v0 }
  0xac   :  { %819 = vmatpush3.bf16.msra.mxu0 %v897_v29 }
  0xad   :  { %844 = vmatprep.subr.bf16.mxu0 %v1062_v0 }
  0xae   :  { %839 = vmatpush3.bf16.msra.mxu1 %v905_v38 }
  0xaf   :  { %821 = vmatmul.mubr.bf16.vlgmr.msra.gmra.mrb[4].mxu0 %v327_v30 }
  0xb0   :  { %860 = vmatprep.mubr.msk.bf16.mxu0 %vm1063_vm0, %v1062_v0  ;;  %845 = vmatpush3.bf16.msra.mxu0 %v906_v39 }
  0xb1   :  { %846 = vmatprep.subr.bf16.mxu0 %v1062_v0 }
  0xb4   :  { %847 = vmatpush3.bf16.msra.mxu0 %v907_v40 }
  0xb5   :  { %848 = vmatprep.subr.bf16.mxu0 %v1062_v0 }
  0xb8   :  { %849 = vmatpush3.bf16.msra.mxu0 %v908_v41 }
  0xb9   :  { %850 = vmatprep.subr.bf16.mxu0 %v1062_v0 }
  0xbc   :  { %851 = vmatpush3.bf16.msra.mxu0 %v909_v42 }
  0xbd   :  { %852 = vmatprep.subr.bf16.mxu0 %v1062_v0 }
  0xc0   :  { %853 = vmatpush3.bf16.msra.mxu0 %v910_v43 }
  0xc1   :  { %854 = vmatprep.subr.bf16.mxu0 %v1062_v0 }
  0xc4   :  { %855 = vmatpush3.bf16.msra.mxu0 %v911_v44 }
  0xc5   :  { %856 = vmatprep.subr.bf16.mxu0 %v1062_v0 }
  0xc8   :  { %857 = vmatpush3.bf16.msra.mxu0 %v912_v63 }
  0xc9   :  { %858 = vmatprep.subr.bf16.mxu0 %v1062_v0 }
  0xcc   :  { %859 = vmatpush3.bf16.msra.mxu0 %v913_v1 }
 0x162   :  { %v233_v45 = vpop.f32.mrb[0].mxu0  ;;  %v321_v47 = vpop.f32.mrb[0].mxu1 }
 0x163   :  { %v782_v46 = vpop.f32.mrb[1].mxu0  ;;  %v322_v48 = vadd.f32 %v321_v47, %v233_v45  ;;  %v802_v50 = vpop.f32.mrb[1].mxu1 }
 0x164   :  { %v236_v49 = vpop.f32.mrb[2].mxu0  ;;  %v324_v52 = vpop.f32.mrb[2].mxu1 }
 0x165   :  { %v783_v51 = vpop.f32.mrb[3].mxu0  ;;  %v803_v53 = vpop.f32.mrb[3].mxu1 }
 0x182   :  { %v426_v54 = vpop.f32.mrb[4].mxu0 }
 0x183   :  { %v432_v56 = vadd.f32 %v426_v54, %v322_v48  ;;  %v822_v57 = vpop.f32.mrb[5].mxu0 }
 0x184   :  { %v429_v58 = vpop.f32.mrb[6].mxu0 }
 0x185   :  { %v440_v59 = vadd.f32 %v700_v55, %v432_v56  ;;  %v823_v60 = vpop.f32.mrb[7].mxu0 }
 0x187   :  { %v441_v61 = vmax.f32 %v440_v59, 0.0 }
 0x189   :  { %v442_v62 = vpack.c.bf16 %v441_v61, %v441_v61 }
 0x18b   :  { %841 = vmatmul.mubr.bf16.vlgmr.msra.gmra.mrb[4].mxu1 %v442_v62 }
 0x25e   :  { %v548_v3 = vpop.f32.mrb[4].mxu1 }
 0x25f   :  { %v549_v4 = vadd.f32 %v701_v2, %v548_v3  ;;  %v842_v5 = vpop.f32.mrb[5].mxu1 }
 0x260   :  { %v551_v6 = vpop.f32.mrb[6].mxu1 }
 0x261   :  { %v554_v7 = vmax.f32 %v549_v4, 0.0  ;;  %v843_v8 = vpop.f32.mrb[7].mxu1 }
 0x263   :  { %v555_v9 = vpack.c.bf16 %v554_v7, %v554_v7 }
 0x265   :  { %861 = vmatmul.mubr.bf16.vlgmr.msra.gmra.mrb[8].mxu0 %v555_v9 }
 0x338   :  { %v661_v11 = vpop.f32.mrb[8].mxu0 }
 0x339   :  { %v662_v0 = vadd.f32 %v710_v10, %v661_v11  ;;  %v862_v12 = vpop.f32.mrb[9].mxu0 }
 0x33a   :  { %v664_v13 = vpop.f32.mrb[10].mxu0 }
 0x33b   :  { %667 = vst [vmem:[%s1314_s10] sm:$0xff] %v662_v0  ;;  %v863_v14 = vpop.f32.mrb[11].mxu0 }
 0x33c   :  { %672 = vsyncpa [#allocation3], 1 }
 0x33d   :  { %673 = vsyncpa [#allocation5], 1 }
 0x33e   :  { %674 = vsyncpa [#allocation8], 1 }
 0x33f   :  { %675 = vsyncpa [#allocation11], 1 }

</bundles_post_ra>
